<compile_context>
chip_gen: v6e
topology: v6e:2x2x1
jax: 0.10.0
libtpu: 0.0.40
codegen_flags: <defaults>
</compile_context>

<pallas_src>
import functools
import math

import jax
import jax.numpy as jnp
from jax.experimental import pallas as pl
from jax.experimental.pallas import tpu as pltpu


# ------------------------------ tiling helper -------------------------------

def _pick_tile(dim, pref, align):
    """Largest legal tile: `pref` if it divides `dim` (pref is a multiple of
    `align`), else the full dim (always legal for Mosaic)."""
    if dim >= pref and dim % pref == 0:
        return pref
    return dim


# ------------------------------ Pallas kernels -------------------------------

def _matmul_kernel(x_ref, w_ref, b_ref, o_ref, acc_ref, *, relu):
    """Tiled y = x @ w + b (optionally relu). Grid = (M, N, K); K innermost."""
    k = pl.program_id(2)

    @pl.when(k == 0)
    def _():
        acc_ref[...] = jnp.zeros_like(acc_ref)

    acc_ref[...] += jnp.dot(x_ref[...].astype(jnp.bfloat16),
                            w_ref[...].astype(jnp.bfloat16),
                            preferred_element_type=jnp.float32)

    @pl.when(k == pl.num_programs(2) - 1)
    def _():
        y = acc_ref[...] + b_ref[...]
        if relu:
            y = jnp.maximum(y, 0.0)
        o_ref[...] = y.astype(o_ref.dtype)


def _proj_res_ln_kernel(a_ref, w_ref, b_ref, r_ref, g_ref, be_ref,
                        o_ref, acc_ref, *, eps):
    """Fused: (a @ w + b) + residual -> LayerNorm.  Grid = (M, K); K innermost."""
    k = pl.program_id(1)

    @pl.when(k == 0)
    def _():
        acc_ref[...] = jnp.zeros_like(acc_ref)

    acc_ref[...] += jnp.dot(a_ref[...].astype(jnp.bfloat16),
                            w_ref[...].astype(jnp.bfloat16),
                            preferred_element_type=jnp.float32)

    @pl.when(k == pl.num_programs(1) - 1)
    def _():
        y = acc_ref[...] + b_ref[...] + r_ref[...]
        mu = jnp.mean(y, axis=-1, keepdims=True)
        var = jnp.mean((y - mu) ** 2, axis=-1, keepdims=True)
        o_ref[...] = ((y - mu) * jax.lax.rsqrt(var + eps)
                      * g_ref[...] + be_ref[...]).astype(o_ref.dtype)


def _ffn_res_ln_kernel(x_ref, w1_ref, b1_ref, w2_ref, b2_ref, g_ref, be_ref,
                       o_ref, *, eps):
    """Fused FFN: relu(x@W1+b1)@W2+b2 + x -> LayerNorm. Hidden never leaves VMEM."""
    x = x_ref[...]                                           # (tm, D) f32
    h = jnp.dot(x.astype(jnp.bfloat16), w1_ref[...].astype(jnp.bfloat16),
                preferred_element_type=jnp.float32)
    h = jnp.maximum(h + b1_ref[...], 0.0)                    # relu, f32
    y = jnp.dot(h.astype(jnp.bfloat16), w2_ref[...].astype(jnp.bfloat16),
                preferred_element_type=jnp.float32)
    y = y + b2_ref[...] + x                                  # residual
    mu = jnp.mean(y, axis=-1, keepdims=True)
    var = jnp.mean((y - mu) ** 2, axis=-1, keepdims=True)
    o_ref[...] = ((y - mu) * jax.lax.rsqrt(var + eps)
                  * g_ref[...] + be_ref[...]).astype(o_ref.dtype)


def _attn_kernel(qkv_ref, o_ref, *, nhead, dh, scale, cf):
    """Per-batch multi-head attention.

    Reads q/k/v head slices directly from the (S, 3D) QKV slab, builds the
    chunked causal mask in-kernel, writes a lane-dense merged (S, D) output.
    """
    # TODO(synk): for very long S (e.g. 2048 on v7x 64 MiB VMEM) convert to a
    # flash-style online-softmax loop over KV tiles instead of dense SxS scores.
    S = qkv_ref.shape[1]
    D = nhead * dh
    qkv = qkv_ref[0]                                          # (S, 3D) f32

    row = jax.lax.broadcasted_iota(jnp.int32, (S, S), 0) // cf
    col = jax.lax.broadcasted_iota(jnp.int32, (S, S), 1) // cf
    neg = jnp.where(col > row, -jnp.inf, 0.0)                 # additive mask, f32

    outs = []
    for h in range(nhead):
        q = qkv[:, h * dh:(h + 1) * dh].astype(jnp.bfloat16)
        k = qkv[:, D + h * dh:D + (h + 1) * dh].astype(jnp.bfloat16)
        v = qkv[:, 2 * D + h * dh:2 * D + (h + 1) * dh].astype(jnp.bfloat16)
        # contract on the shared last dim (no transpose of k)
        s = jax.lax.dot_general(q, k, (((1,), (1,)), ((), ())),
                                preferred_element_type=jnp.float32) * scale
        s = s + neg
        s = s - jnp.max(s, axis=-1, keepdims=True)
        p = jnp.exp(s)
        inv = pl.reciprocal(jnp.sum(p, axis=-1, keepdims=True), approx=True)
        o = jax.lax.dot_general(p.astype(jnp.bfloat16), v, (((1,), (0,)), ((), ())),
                                preferred_element_type=jnp.float32)
        outs.append(o * inv)
    # single lane-dense (S, D) store (heads already merged in the right layout)
    o_ref[0] = jnp.concatenate(outs, axis=-1)


# ------------------------------ Pallas wrappers ------------------------------

def pallas_linear(x2d, w, b, relu=False, tm=256, tn=256, tk=512):
    M, K = x2d.shape
    _, N = w.shape
    tm = _pick_tile(M, tm, 8)
    tn = _pick_tile(N, tn, 128)
    tk = _pick_tile(K, tk, 128)
    return pl.pallas_call(
        functools.partial(_matmul_kernel, relu=relu),
        out_shape=jax.ShapeDtypeStruct((M, N), jnp.float32),
        grid=(M // tm, N // tn, K // tk),
        in_specs=[pl.BlockSpec((tm, tk), lambda i, j, k: (i, k)),
                  pl.BlockSpec((tk, tn), lambda i, j, k: (k, j)),
                  pl.BlockSpec((1, tn), lambda i, j, k: (0, j))],
        out_specs=pl.BlockSpec((tm, tn), lambda i, j, k: (i, j)),
        scratch_shapes=[pltpu.VMEM((tm, tn), jnp.float32)],
        compiler_params=pltpu.CompilerParams(
            dimension_semantics=("parallel", "parallel", "arbitrary")),
    )(x2d, w, b.reshape(1, N))


def pallas_outproj_res_ln(a2d, w, b, resid2d, gamma, beta, eps=1e-5,
                          tm=256, tk=512):
    M, K = a2d.shape
    _, D = w.shape
    tm = _pick_tile(M, tm, 8)
    tk = _pick_tile(K, tk, 128)
    return pl.pallas_call(
        functools.partial(_proj_res_ln_kernel, eps=eps),
        out_shape=jax.ShapeDtypeStruct((M, D), jnp.float32),
        grid=(M // tm, K // tk),
        in_specs=[pl.BlockSpec((tm, tk), lambda i, k: (i, k)),
                  pl.BlockSpec((tk, D), lambda i, k: (k, 0)),
                  pl.BlockSpec((1, D), lambda i, k: (0, 0)),
                  pl.BlockSpec((tm, D), lambda i, k: (i, 0)),
                  pl.BlockSpec((1, D), lambda i, k: (0, 0)),
                  pl.BlockSpec((1, D), lambda i, k: (0, 0))],
        out_specs=pl.BlockSpec((tm, D), lambda i, k: (i, 0)),
        scratch_shapes=[pltpu.VMEM((tm, D), jnp.float32)],
        compiler_params=pltpu.CompilerParams(
            dimension_semantics=("parallel", "arbitrary")),
    )(a2d, w, b.reshape(1, D), resid2d, gamma.reshape(1, D), beta.reshape(1, D))


def pallas_ffn_res_ln(x2d, w1, b1, w2, b2, gamma, beta, eps=1e-5, tm=128):
    M, D = x2d.shape
    _, H = w1.shape
    tm = _pick_tile(M, tm, 8)
    return pl.pallas_call(
        functools.partial(_ffn_res_ln_kernel, eps=eps),
        out_shape=jax.ShapeDtypeStruct((M, D), jnp.float32),
        grid=(M // tm,),
        in_specs=[pl.BlockSpec((tm, D), lambda i: (i, 0)),
                  pl.BlockSpec((D, H), lambda i: (0, 0)),
                  pl.BlockSpec((1, H), lambda i: (0, 0)),
                  pl.BlockSpec((H, D), lambda i: (0, 0)),
                  pl.BlockSpec((1, D), lambda i: (0, 0)),
                  pl.BlockSpec((1, D), lambda i: (0, 0)),
                  pl.BlockSpec((1, D), lambda i: (0, 0))],
        out_specs=pl.BlockSpec((tm, D), lambda i: (i, 0)),
        compiler_params=pltpu.CompilerParams(dimension_semantics=("parallel",)),
    )(x2d, w1, b1.reshape(1, H), w2, b2.reshape(1, D),
      gamma.reshape(1, D), beta.reshape(1, D))


def pallas_attention(qkv3d, *, nhead, cf):
    B, S, threeD = qkv3d.shape
    D = threeD // 3
    dh = D // nhead
    return pl.pallas_call(
        functools.partial(_attn_kernel, nhead=nhead, dh=dh,
                          scale=1.0 / math.sqrt(dh), cf=cf),
        out_shape=jax.ShapeDtypeStruct((B, S, D), jnp.float32),
        grid=(B,),
        in_specs=[pl.BlockSpec((1, S, threeD), lambda b: (b, 0, 0))],
        out_specs=pl.BlockSpec((1, S, D), lambda b: (b, 0, 0)),
        compiler_params=pltpu.CompilerParams(dimension_semantics=("parallel",)),
    )(qkv3d)


# ------------------------------ model definition -----------------------------

def encoder_layer(x, p, *, nhead, cf):
    """PyTorch TransformerEncoderLayer (post-norm, relu, batch_first), eval mode."""
    B, S, D = x.shape
    M = B * S
    x2 = x.reshape(M, D)

    # self-attention block
    qkv = pallas_linear(x2, p['in_w'], p['in_b'])                 # (M, 3D)
    attn = pallas_attention(qkv.reshape(B, S, 3 * D), nhead=nhead, cf=cf)
    x2 = pallas_outproj_res_ln(attn.reshape(M, D), p['out_w'], p['out_b'],
                               x2, p['ln1_g'], p['ln1_b'])

    # feed-forward block (fully fused)
    x2 = pallas_ffn_res_ln(x2, p['ff1_w'], p['ff1_b'],
                           p['ff2_w'], p['ff2_b'], p['ln2_g'], p['ln2_b'])
    return x2.reshape(B, S, D)


def init_params(key, ntoken, d_model, nhead, d_hid, nlayers_pre, nlayers_post, max_len):
    keys = iter(jax.random.split(key, 256))

    def u(shape, a=0.1, dtype=jnp.float32):
        return jax.random.uniform(next(keys), shape, jnp.float32, -a, a).astype(dtype)

    def layer():
        return dict(
            in_w=u((d_model, 3 * d_model), dtype=jnp.bfloat16),
            in_b=jnp.zeros((3 * d_model,), jnp.float32),
            out_w=u((d_model, d_model), dtype=jnp.bfloat16),
            out_b=jnp.zeros((d_model,), jnp.float32),
            ff1_w=u((d_model, d_hid), dtype=jnp.bfloat16),
            ff1_b=jnp.zeros((d_hid,), jnp.float32),
            ff2_w=u((d_hid, d_model), dtype=jnp.bfloat16),
            ff2_b=jnp.zeros((d_model,), jnp.float32),
            ln1_g=jnp.ones((d_model,), jnp.float32), ln1_b=jnp.zeros((d_model,), jnp.float32),
            ln2_g=jnp.ones((d_model,), jnp.float32), ln2_b=jnp.zeros((d_model,), jnp.float32),
        )

    return dict(
        embedding=u((ntoken, d_model)),            # nn.Embedding, uniform(-0.1, 0.1)
        pos=u((max_len, d_model)),                 # LearnedPositionEncoding
        pre=[layer() for _ in range(nlayers_pre)],
        post=[layer() for _ in range(nlayers_post)],
        head_w=u((d_model, ntoken), dtype=jnp.bfloat16),   # self.linear (include_linear)
        head_b=jnp.zeros((ntoken,), jnp.float32),
    )


def pool_expand_transformer_forward(params, src, *, d_model, nhead, max_len,
                                    compression_factor=1, include_linear=True):
    """src: int32 [batch, seq] (vector_input=False).  Returns [batch, seq, ntoken]."""
    # TODO(synk): `average()` / `expand()` (compression_factor != 1 branches) are
    # undefined in the reference source; only the compression_factor == 1 path is implemented.
    assert compression_factor == 1
    B, S = src.shape
    assert S <= max_len, "sequence longer than learned positional table"

    # Glue: embedding gather + sqrt(d_model) scale + learned pos-add fuse into a
    # single XLA elementwise pass (no separate Pallas elementwise kernel needed).
    x = (jnp.take(params['embedding'], src, axis=0) * math.sqrt(d_model)
         + params['pos'][:S])

    # Chunked causal mask is generated inside the attention kernel (iota+where);
    # for compression_factor == 1 this matches chunked_triu(max_len, 1)[:S, :S].
    for p in params['pre']:
        x = encoder_layer(x, p, nhead=nhead, cf=compression_factor)
    for p in params['post']:
        x = encoder_layer(x, p, nhead=nhead, cf=compression_factor)

    if include_linear:
        x = pallas_linear(x.reshape(B * S, d_model), params['head_w'], params['head_b'])
        x = x.reshape(B, S, -1)
    return x


# ---------------------------------- main --------------------------------------

if __name__ == "__main__":
    ntoken, d_model, nhead, d_hid = 16, 32, 4, 64
    nlayers_pre, nlayers_post = 1, 1
    max_len = 8
    batch, seq = 2, max_len

    key = jax.random.PRNGKey(0)
    pkey, dkey = jax.random.split(key)
    params = init_params(pkey, ntoken, d_model, nhead, d_hid,
                         nlayers_pre, nlayers_post, max_len)
    src = jax.random.randint(dkey, (batch, seq), 0, ntoken, dtype=jnp.int32)

    out = pool_expand_transformer_forward(
        params, src, d_model=d_model, nhead=nhead, max_len=max_len,
        compression_factor=1, include_linear=True)
    out = jax.block_until_ready(out)

    assert out.shape == (batch, seq, ntoken), out.shape
    assert jnp.all(jnp.isfinite(out))
    print("KERNEL_OK")
</pallas_src>

<mosaic_0001>
module attributes {stable_mosaic.version = 11 : i64} {
  func.func @_matmul_kernel(%arg0: i32, %arg1: i32, %arg2: i32, %arg3: memref<16x32xf32, #tpu.memory_space<vmem>>, %arg4: memref<32x96xbf16, #tpu.memory_space<vmem>>, %arg5: memref<1x96xf32, #tpu.memory_space<vmem>>, %arg6: memref<16x96xf32, #tpu.memory_space<vmem>>, %arg7: memref<16x96xf32, #tpu.memory_space<vmem>>) attributes {dimension_semantics = [#tpu.dimension_semantics<parallel>, #tpu.dimension_semantics<parallel>, #tpu.dimension_semantics<arbitrary>], iteration_bounds = array<i64: 1, 1, 1>, scalar_prefetch = 0 : i64, scratch_operands = 1 : i64, tpu.core_type = #tpu.core_type<tc>, window_params = [{transform_indices = @transform_0, window_bounds = array<i64: 16, 32>}, {transform_indices = @transform_1, window_bounds = array<i64: 32, 96>}, {transform_indices = @transform_2, window_bounds = array<i64: 1, 96>}, {transform_indices = @transform_3, window_bounds = array<i64: 16, 96>}]} {
    %c0_i32 = arith.constant 0 : i32
    %0 = arith.cmpi eq, %arg2, %c0_i32 : i32
    %1 = arith.extui %0 : i1 to i32
    %c0_i32_0 = arith.constant 0 : i32
    %2 = arith.cmpi ne, %1, %c0_i32_0 : i32
    scf.if %2 {
      %cst_10 = arith.constant 0.000000e+00 : f32
      %13 = vector.broadcast %cst_10 : f32 to vector<16x96xf32>
      %c0_11 = arith.constant 0 : index
      %c0_12 = arith.constant 0 : index
      %14 = vector.load %arg7[%c0_11, %c0_12] : memref<16x96xf32, #tpu.memory_space<vmem>>, vector<16x96xf32>
      tpu.vector_store %arg7[%c0_11, %c0_12], %13 {strides = array<i32>} : memref<16x96xf32, #tpu.memory_space<vmem>>, vector<16x96xf32>,
    } else {
    }
    %c0 = arith.constant 0 : index
    %c0_1 = arith.constant 0 : index
    %3 = vector.load %arg7[%c0, %c0_1] : memref<16x96xf32, #tpu.memory_space<vmem>>, vector<16x96xf32>
    %c0_2 = arith.constant 0 : index
    %c0_3 = arith.constant 0 : index
    %4 = vector.load %arg3[%c0_2, %c0_3] : memref<16x32xf32, #tpu.memory_space<vmem>>, vector<16x32xf32>
    %5 = arith.truncf %4 : vector<16x32xf32> to vector<16x32xbf16>
    %c0_4 = arith.constant 0 : index
    %c0_5 = arith.constant 0 : index
    %6 = vector.load %arg4[%c0_4, %c0_5] : memref<32x96xbf16, #tpu.memory_space<vmem>>, vector<32x96xbf16>
    %cst = arith.constant dense<0.000000e+00> : vector<16x96xf32>
    %7 = tpu.matmul %5, %6, %cst {dimension_numbers = #tpu.dot_dimension_numbers<[1], [0], [0], [1], [0, 0, 1, 1], [], []>} : vector<16x32xbf16>, vector<32x96xbf16>, vector<16x96xf32> -> vector<16x96xf32>
    %8 = arith.addf %3, %7 : vector<16x96xf32>
    %c0_6 = arith.constant 0 : index
    %c0_7 = arith.constant 0 : index
    %9 = vector.load %arg7[%c0_6, %c0_7] : memref<16x96xf32, #tpu.memory_space<vmem>>, vector<16x96xf32>
    tpu.vector_store %arg7[%c0_6, %c0_7], %8 {strides = array<i32>} : memref<16x96xf32, #tpu.memory_space<vmem>>, vector<16x96xf32>,
    %c0_i32_8 = arith.constant 0 : i32
    %10 = arith.cmpi eq, %arg2, %c0_i32_8 : i32
    %11 = arith.extui %10 : i1 to i32
    %c0_i32_9 = arith.constant 0 : i32
    %12 = arith.cmpi ne, %11, %c0_i32_9 : i32
    scf.if %12 {
      %c0_10 = arith.constant 0 : index
      %c0_11 = arith.constant 0 : index
      %13 = vector.load %arg7[%c0_10, %c0_11] : memref<16x96xf32, #tpu.memory_space<vmem>>, vector<16x96xf32>
      %c0_12 = arith.constant 0 : index
      %c0_13 = arith.constant 0 : index
      %14 = vector.load %arg5[%c0_12, %c0_13] : memref<1x96xf32, #tpu.memory_space<vmem>>, vector<1x96xf32>
      %15 = vector.broadcast %14 : vector<1x96xf32> to vector<16x96xf32>
      %16 = arith.addf %13, %15 : vector<16x96xf32>
      %c0_14 = arith.constant 0 : index
      %c0_15 = arith.constant 0 : index
      %17 = vector.load %arg6[%c0_14, %c0_15] : memref<16x96xf32, #tpu.memory_space<vmem>>, vector<16x96xf32>
      tpu.vector_store %arg6[%c0_14, %c0_15], %16 {strides = array<i32>} : memref<16x96xf32, #tpu.memory_space<vmem>>, vector<16x96xf32>,
    } else {
    }
    return
  }
  func.func @transform_0(%arg0: i32, %arg1: i32, %arg2: i32) -> (i32, i32) {
    %c0_i32 = arith.constant 0 : i32
    return %arg0, %arg2 : i32, i32
  }
  func.func @transform_1(%arg0: i32, %arg1: i32, %arg2: i32) -> (i32, i32) {
    %c0_i32 = arith.constant 0 : i32
    return %arg2, %arg1 : i32, i32
  }
  func.func @transform_2(%arg0: i32, %arg1: i32, %arg2: i32) -> (i32, i32) {
    %c0_i32 = arith.constant 0 : i32
    %c0_i32_0 = arith.constant 0 : i32
    return %c0_i32, %arg1 : i32, i32
  }
  func.func @transform_3(%arg0: i32, %arg1: i32, %arg2: i32) -> (i32, i32) {
    %c0_i32 = arith.constant 0 : i32
    return %arg0, %arg1 : i32, i32
  }
}

</mosaic_0001>

<bundles_post_ra>
// kernel: tpu_custom_call.1
= control target key start
LH: loop header
LB: loop body
LE: loop exit
PB: predicated region body
PF: predicated region fallthrough
CT: control target
= control target key end

     0   :  { %8 = vsyncpa [#allocation4], 0  ;;  %s301_s0 = inlined_call_operand.hbm [shape: f32[16,32], index: 0, kind: input, shape index: {}]   ;;  %s302_s1 = inlined_call_operand.hbm [shape: bf16[32,96], index: 1, kind: input, shape index: {}]   ;;  %s303_s2 = inlined_call_operand.vmem [shape: f32[1,96], index: 2, kind: input, shape index: {}]   ;;  %s304_s3 = inlined_call_operand.hbm [shape: f32[16,96], index: 3, kind: output, shape index: {}]  }
   0x1   :  { %9 = vsyncpa [#allocation7], 0 }
   0x2   :  { %10 = vsyncpa [#allocation5], 0  ;;  %s248_s12 = smov [#allocation3]  }
   0x3   :  { %s16_s13 = sshll.u32 %s248_s12, 4  ;;  %s17_s13 = int_to_ptr.vmem [resolvable:$true] %s16_s13 }
   0x4   :  { %s190_s14 = scalar_lea.vmem %s17_s13, 256  ;;  %p195_p1 = scmp.lt.s32.totalorder %s17_s13, %s17_s13 }
   0x5   :  { %p191_p0 = scmp.ne.s32.totalorder %s17_s13, %s190_s14  ;;  %p196_p2 = scmp.lt.s32.totalorder %s190_s14, %s190_s14 }
   0x7   :  { %p197_p3 = por %p196_p2, %p195_p1 }
   0x9   :  { %p198_p4 = pnand %p197_p3, %p191_p0 }
   0xb   :  { %201 = shalt.err (!%p198_p4)
}
   0xc   :  { %s249_s15 = smov 128   ;;  %s250_s16 = smov 8  }
   0xd   :  { %22 = dma.hbm_to_vmem [thread:$0]  %s301_s0, 256, %s17_s13, [#allocation4], %s249_s15, %s249_s15, %s250_s16  }
   0xe   :  { %s251_s19 = smov [#allocation6]  }
   0xf   :  { %s28_s20 = sshll.u32 %s251_s19, 4  ;;  %s29_s20 = int_to_ptr.vmem [resolvable:$true] %s28_s20 }
  0x10   :  { %s210_s21 = scalar_lea.vmem %s29_s20, 256  ;;  %p215_p6 = scmp.lt.s32.totalorder %s29_s20, %s29_s20 }
  0x11   :  { %p211_p5 = scmp.ne.s32.totalorder %s29_s20, %s210_s21  ;;  %p216_p7 = scmp.lt.s32.totalorder %s210_s21, %s210_s21 }
  0x13   :  { %p217_p8 = por %p216_p7, %p215_p6 }
  0x15   :  { %p218_p9 = pnand %p217_p8, %p211_p5 }
  0x17   :  { %221 = shalt.err (!%p218_p9)
}
  0x18   :  { %s252_s22 = smov 64   ;;  %s253_s23 = smov 4  }
  0x19   :  { %34 = dma.hbm_to_vmem [thread:$0]  %s302_s1, 256, %s29_s20, [#allocation7], %s252_s22, %s252_s22, %s253_s23  }
  0x1a   :  { %242 = dma.done.wait [#allocation4], 256  }
  0x1b   :  { %243 = vsyncadd [#allocation4], 4294967040 }
  0x1c   :  { %244 = dma.done.wait [#allocation7], 256  }
  0x1d   :  { %245 = vsyncadd [#allocation7], 4294967040  ;;  %vm48_vm0 = vcmask 785408   ;;  %v254_v0 = vmov 0.0   ;;  %vm255_vm1 = vmmov 0   ;;  %v180_v1 = vld [vmem:[#allocation6 + $0x8] sm:$0xff]  }
  0x1e   :  { %49 = vst.msk [vmem:[#allocation2] sm:$0xff] %vm48_vm0, %v254_v0  ;;  %50 = vst.msk [vmem:[#allocation2 + $0x8] sm:$0xff] %vm48_vm0, %v254_v0  ;;  %163 = vmatprep.subr.bf16.mxu0 %v254_v0  ;;  %167 = vmatprep.mubr.msk.bf16.mxu0 %vm255_vm1, %v254_v0  ;;  %v181_v2 = vld [vmem:[#allocation6] sm:$0xff]   ;;  %v53_v3 = vld [vmem:[#allocation3] sm:$0xff]  ;;  %vm72_vm2 = vcmask 261120   ;;  %s256_s26 = smov [#allocation8]  }
  0x1f   :  { %164 = vmatpush3.bf16.msra.mxu0 %v180_v1  ;;  %v54_v4 = vld [vmem:[#allocation3 + $0x8] sm:$0xff]  ;;  %v159_v14 = vld [vmem:[%s303_s2] ss:$0 sm:$0xff]  ;;  %s143_s27 = sshll.u32 %s256_s26, 4  ;;  %s144_s27 = int_to_ptr.vmem [resolvable:$true] %s143_s27 }
  0x20   :  { %165 = vmatprep.subr.bf16.mxu0 %v254_v0  ;;  %v55_v5 = vpack.c.bf16 %v54_v4, %v53_v3  ;;  %s222_s28 = scalar_lea.vmem %s144_s27, 256  ;;  %p227_p11 = scmp.lt.s32.totalorder %s144_s27, %s144_s27 }
  0x21   :  { %p223_p10 = scmp.ne.s32.totalorder %s144_s27, %s222_s28  ;;  %p228_p12 = scmp.lt.s32.totalorder %s222_s28, %s222_s28 }
  0x23   :  { %166 = vmatpush3.bf16.msra.mxu0 %v181_v2  ;;  %p229_p13 = por %p228_p12, %p227_p11 }
  0x25   :  { %v51_v6 = vld [vmem:[#allocation2] sm:$0xff]  ;;  %v52_v10 = vld [vmem:[#allocation2 + $0x8] sm:$0xff]  ;;  %p230_p0 = pnand %p229_p13, %p223_p10 }
  0x26   :  { %168 = vmatmul.mubr.msk.bf16.vlgmr.msra.gmra.mxu0 %vm72_vm2, %v55_v5 }
  0xe6   :  { %v110_v7 = vpop.f32.mrf.mxu0 }
  0xe7   :  { %v117_v8 = vadd.f32 %v110_v7, %v51_v6 }
  0xe8   :  { %v169_v9 = vpop.f32.mrf.mxu0 }
  0xe9   :  { %120 = vst.msk [vmem:[#allocation2] sm:$0xff] %vm48_vm0, %v117_v8 }
  0xea   :  { %v113_v11 = vpop.f32.mrf.mxu0 }
  0xeb   :  { %v118_v12 = vadd.f32 %v113_v11, %v52_v10 }
  0xec   :  { %v170_v13 = vpop.f32.mrf.mxu0 }
  0xed   :  { %121 = vst.msk [vmem:[#allocation2 + $0x8] sm:$0xff] %vm48_vm0, %v118_v12 }
  0xf0   :  { %v125_v15 = vld [vmem:[#allocation2] sm:$0xff] }
  0xf1   :  { %v134_v16 = vadd.f32 %v159_v14, %v125_v15 }
  0xf3   :  { %136 = vst.msk [vmem:[#allocation8] sm:$0xff] %vm48_vm0, %v134_v16 }
  0xf4   :  { %v126_v17 = vld [vmem:[#allocation2 + $0x8] sm:$0xff] }
  0xf5   :  { %v135_v18 = vadd.f32 %v159_v14, %v126_v17 }
  0xf7   :  { %137 = vst.msk [vmem:[#allocation8 + $0x8] sm:$0xff] %vm48_vm0, %v135_v18 }
  0xf8   :  { %233 = shalt.err (!%p230_p0)
}
  0xf9   :  { %149 = dma.vmem_to_hbm [thread:$0]  %s144_s27, 256, %s304_s3, [#allocation5], %s249_s15, %s249_s15, %s250_s16  }
  0xfa   :  { %246 = dma.done.wait [#allocation5], 256  }
  0xfb   :  { %247 = vsyncadd [#allocation5], 4294967040 }
  0xfc   :  { %153 = vsyncpa [#allocation4], 1 }
  0xfd   :  { %154 = vsyncpa [#allocation7], 1 }
  0xfe   :  { %155 = vsyncpa [#allocation5], 1 }

</bundles_post_ra>
